<compile_context>
chip_gen: v7x
topology: tpu7x:2x2x1
jax: 0.10.0
libtpu: 0.0.40
codegen_flags: <defaults>
</compile_context>

<pallas_src>
import functools

import jax
import jax.numpy as jnp
from jax.experimental import pallas as pl
from jax.experimental.pallas import tpu as pltpu


def _round_up(x, m):
    return (x + m - 1) // m * m


def _pick_tm(M, block_rows):
    """Row-tile size. No host-side padding: the ragged tail tile is masked by Pallas."""
    if M <= 8:
        return M                                   # single full-extent block (always legal)
    # Multiple of 8, <= block_rows, and try to get >= 2 row tiles (v7x megacore).
    tm = min(block_rows, _round_up(pl.cdiv(M, 2), 8))
    tm = min(tm, (M // 8) * 8)                     # keep tm <= M and a multiple of 8
    return max(tm, 8)


def _vmem_limit(est_bytes):
    # Explicit scoped-VMEM request with headroom; capped so it fits v7x's 64 MiB.
    return int(min(max(2 * est_bytes + (4 << 20), 16 << 20), 56 << 20))


# ----------------------- standalone LayerNorm kernel -------------------------
def _layernorm_kernel(x_ref, gamma_ref, beta_ref, o_ref, *, eps, activation):
    x = x_ref[...].astype(jnp.float32)                      # (tm, D)
    mean = jnp.mean(x, axis=-1, keepdims=True)
    xc = x - mean
    var = jnp.mean(xc * xc, axis=-1, keepdims=True)         # biased var (nn.LayerNorm)
    y = xc * jax.lax.rsqrt(var + eps) * gamma_ref[...] + beta_ref[...]
    if activation is not None:                               # fused elementwise fn
        y = activation(y)
    o_ref[...] = y.astype(o_ref.dtype)


def layernorm(x, gamma, beta, *, eps=1e-5, activation=None, block_rows=512):
    M, D = x.shape
    tm = _pick_tm(M, block_rows)
    est = 4 * tm * D * jnp.dtype(x.dtype).itemsize + 2 * D * 4
    return pl.pallas_call(
        functools.partial(_layernorm_kernel, eps=eps, activation=activation),
        out_shape=jax.ShapeDtypeStruct((M, D), x.dtype),
        grid_spec=pltpu.PrefetchScalarGridSpec(
            num_scalar_prefetch=0,
            grid=(pl.cdiv(M, tm),),
            in_specs=[
                pl.BlockSpec((tm, D), lambda i: (i, 0)),
                pl.BlockSpec((1, D), lambda i: (0, 0)),
                pl.BlockSpec((1, D), lambda i: (0, 0)),
            ],
            out_specs=pl.BlockSpec((tm, D), lambda i: (i, 0)),
        ),
        compiler_params=pltpu.CompilerParams(
            dimension_semantics=("parallel",),
            vmem_limit_bytes=_vmem_limit(est)),
    )(x, gamma.reshape(1, D), beta.reshape(1, D))


# -------------------- fused LayerNorm + Linear kernels ------------------------
def _prenorm_linear_resident_kernel(x_ref, w_ref, b_ref, o_ref, *, eps):
    # gamma/beta already folded into w/b; whole weight panel is resident in VMEM.
    x = x_ref[...].astype(jnp.float32)                       # (tm, D)
    mean = jnp.mean(x, axis=-1, keepdims=True)
    xc = x - mean
    var = jnp.mean(xc * xc, axis=-1, keepdims=True)
    xn = (xc * jax.lax.rsqrt(var + eps)).astype(x_ref.dtype)  # native-dtype MXU LHS
    y = jnp.dot(xn, w_ref[...], preferred_element_type=jnp.float32)
    o_ref[...] = (y + b_ref[...]).astype(o_ref.dtype)


def _prenorm_linear_tiled_kernel(x_ref, w_ref, b_ref, o_ref, xn_ref, *, eps):
    # Normalize the row tile once (first N tile only); cache in VMEM in input dtype.
    @pl.when(pl.program_id(1) == 0)
    def _():
        x = x_ref[...].astype(jnp.float32)
        mean = jnp.mean(x, axis=-1, keepdims=True)
        xc = x - mean
        var = jnp.mean(xc * xc, axis=-1, keepdims=True)
        xn_ref[...] = (xc * jax.lax.rsqrt(var + eps)).astype(xn_ref.dtype)

    y = jnp.dot(xn_ref[...], w_ref[...], preferred_element_type=jnp.float32)
    o_ref[...] = (y + b_ref[...]).astype(o_ref.dtype)


def prenorm_linear(x, w_f, b_f, *, eps=1e-5, block_rows=256):
    """Computes Linear(LayerNorm(x)) in one fused pallas_call.

    `w_f` / `b_f` must already have gamma/beta folded in (done once at init).
    """
    M, D = x.shape
    Dw, N = w_f.shape
    assert D == Dw
    xdt = jnp.dtype(x.dtype).itemsize
    wdt = jnp.dtype(w_f.dtype).itemsize

    tm = _pick_tm(M, block_rows)

    # ---- Path A: whole weight panel resident in VMEM (DMA'd once, constant index).
    est_a = 2 * tm * D * xdt + 2 * D * N * wdt + 2 * tm * N * xdt + 4 * N
    if est_a <= (28 << 20):
        return pl.pallas_call(
            functools.partial(_prenorm_linear_resident_kernel, eps=eps),
            out_shape=jax.ShapeDtypeStruct((M, N), x.dtype),
            grid_spec=pltpu.PrefetchScalarGridSpec(
                num_scalar_prefetch=0,
                grid=(pl.cdiv(M, tm),),
                in_specs=[
                    pl.BlockSpec((tm, D), lambda i: (i, 0)),   # x row tile
                    pl.BlockSpec((D, N), lambda i: (0, 0)),    # weights: constant -> one DMA
                    pl.BlockSpec((1, N), lambda i: (0, 0)),    # bias
                ],
                out_specs=pl.BlockSpec((tm, N), lambda i: (i, 0)),
            ),
            compiler_params=pltpu.CompilerParams(
                dimension_semantics=("parallel",),
                vmem_limit_bytes=_vmem_limit(est_a)),
        )(x, w_f, b_f)

    # ---- Path B: column-tiled weights. N was padded to a 128 multiple at fold time.
    assert N % 128 == 0, "fold step must pad N to a multiple of 128 for the tiled path"
    tn = 256 if N % 256 == 0 else 128
    tm_b = _pick_tm(M, max(block_rows, 512))       # bigger row tile -> more weight reuse

    def est_b(tm_, tn_):
        return (3 * tm_ * D * xdt            # x double buffer + xn scratch
                + 2 * D * tn_ * wdt           # weight column tiles (double buffered)
                + 2 * tm_ * tn_ * xdt         # output tiles
                + 4 * tn_)

    while est_b(tm_b, tn) > (28 << 20) and tm_b > 8:
        tm_b = max(8, (tm_b // 2 // 8) * 8)
    while est_b(tm_b, tn) > (28 << 20) and tn > 128:
        tn //= 2

    return pl.pallas_call(
        functools.partial(_prenorm_linear_tiled_kernel, eps=eps),
        out_shape=jax.ShapeDtypeStruct((M, N), x.dtype),
        grid_spec=pltpu.PrefetchScalarGridSpec(
            num_scalar_prefetch=0,
            grid=(pl.cdiv(M, tm_b), N // tn),
            in_specs=[
                pl.BlockSpec((tm_b, D), lambda i, j: (i, 0)),  # x row tile (reused over j)
                pl.BlockSpec((D, tn), lambda i, j: (0, j)),    # weight column tile
                pl.BlockSpec((1, tn), lambda i, j: (0, j)),    # bias tile
            ],
            out_specs=pl.BlockSpec((tm_b, tn), lambda i, j: (i, j)),
            scratch_shapes=[pltpu.VMEM((tm_b, D), x.dtype)],   # normalized rows, input dtype
        ),
        compiler_params=pltpu.CompilerParams(
            dimension_semantics=("parallel", "arbitrary"),
            vmem_limit_bytes=_vmem_limit(est_b(tm_b, tn))),
    )(x, w_f, b_f)


# --------------------------------- modules ------------------------------------
class Linear:
    """The wrapped `fn`: y @ w + b. Fused into the LayerNorm kernel under PreNorm."""

    def __init__(self, w, b):
        self.w = w
        self.b = b

    def __call__(self, y):
        return y @ self.w + self.b


_ELEMENTWISE_FNS = (jax.nn.gelu, jax.nn.relu, jax.nn.silu, jax.nn.sigmoid, jnp.tanh)


def _fold_affine_into_linear(gamma, beta, w, b):
    """Fold LayerNorm affine into the linear layer (done once, cached)."""
    D, N = w.shape
    w32 = w.astype(jnp.float32)
    w_f = (gamma.astype(jnp.float32)[:, None] * w32).astype(w.dtype)
    b_f = (beta.astype(jnp.float32) @ w32 + b.astype(jnp.float32)).reshape(1, N)
    # Pad the output dim once to a lane-dense multiple of 128 (only when needed)
    # so the column-tiled path never double-buffers an odd-width weight panel.
    if N > 128 and N % 128 != 0:
        Np = _round_up(N, 128)
        w_f = jnp.pad(w_f, ((0, 0), (0, Np - N)))
        b_f = jnp.pad(b_f, ((0, 0), (0, Np - N)))
    return w_f, b_f, N


class PreNorm:
    """JAX/Pallas port of the PyTorch PreNorm module: fn(LayerNorm(x))."""

    def __init__(self, dim, fn, *, eps=1e-5, gamma=None, beta=None):
        self.dim = dim
        self.fn = fn
        self.eps = eps
        # nn.LayerNorm default init: weight = 1, bias = 0 (overridable).
        self.gamma = jnp.ones((dim,), jnp.float32) if gamma is None else gamma
        self.beta = jnp.zeros((dim,), jnp.float32) if beta is None else beta
        # Cache the folded / padded linear weights once (not per forward call).
        self._w_f = self._b_f = self._n_out = None
        if isinstance(fn, Linear):
            self._w_f, self._b_f, self._n_out = _fold_affine_into_linear(
                self.gamma, self.beta, fn.w, fn.b)

    def __call__(self, x, **kwargs):
        lead = x.shape[:-1]
        x2 = x.reshape(-1, self.dim)
        # Fused LayerNorm + Linear path (single pallas_call).
        if self._w_f is not None and not kwargs:
            out2 = prenorm_linear(x2, self._w_f, self._b_f, eps=self.eps)
            if out2.shape[1] != self._n_out:
                out2 = out2[:, :self._n_out]
            return out2.reshape(*lead, self._n_out)
        # Known elementwise fn: fuse it into the LayerNorm kernel (one HBM pass).
        if not kwargs and any(self.fn is g for g in _ELEMENTWISE_FNS):
            y2 = layernorm(x2, self.gamma, self.beta, eps=self.eps, activation=self.fn)
            return y2.reshape(*lead, self.dim)
        # Generic path: tiled LayerNorm kernel, then the arbitrary wrapped fn.
        # TODO(synk): arbitrary fn (e.g. Attention / FeedForward) stays as plain JAX.
        y2 = layernorm(x2, self.gamma, self.beta, eps=self.eps)
        return self.fn(y2.reshape(*lead, self.dim), **kwargs)


if __name__ == "__main__":
    key = jax.random.PRNGKey(0)
    batch, seq, dim = 2, 8, 32
    eps = 1e-5

    kx, kw, kb, kg, kbeta, kr = jax.random.split(key, 6)
    x = jax.random.normal(kx, (batch, seq, dim), dtype=jnp.float32)

    # Wrapped fn: Linear(dim, dim).
    w = jax.random.normal(kw, (dim, dim), dtype=jnp.float32) * (1.0 / jnp.sqrt(dim))
    b_lin = jax.random.normal(kb, (dim,), dtype=jnp.float32) * 0.01

    # Non-trivial LayerNorm params to exercise the gamma/beta folding.
    gamma = 1.0 + 0.1 * jax.random.normal(kg, (dim,), dtype=jnp.float32)
    beta = 0.05 * jax.random.normal(kbeta, (dim,), dtype=jnp.float32)

    def ln_ref(a):
        mean = jnp.mean(a, axis=-1, keepdims=True)
        var = jnp.mean((a - mean) ** 2, axis=-1, keepdims=True)
        return (a - mean) / jnp.sqrt(var + eps) * gamma + beta

    # 1) Fused PreNorm(Linear) path.
    prenorm_lin = PreNorm(dim, Linear(w, b_lin), eps=eps, gamma=gamma, beta=beta)
    out1 = prenorm_lin(x)
    jax.block_until_ready(out1)
    ref1 = ln_ref(x) @ w + b_lin
    assert out1.shape == (batch, seq, dim)
    assert jnp.allclose(out1, ref1, atol=1e-4, rtol=1e-4)

    # 2) Fused path with a ragged row count (exercises masked tail tile, no padding).
    x_rag = jax.random.normal(kr, (3, 7, dim), dtype=jnp.float32)
    out1r = prenorm_lin(x_rag)
    jax.block_until_ready(out1r)
    ref1r = ln_ref(x_rag) @ w + b_lin
    assert out1r.shape == (3, 7, dim)
    assert jnp.allclose(out1r, ref1r, atol=1e-4, rtol=1e-4)

    # 3) Elementwise fn (gelu) fused into the LayerNorm kernel.
    prenorm_gelu = PreNorm(dim, jax.nn.gelu, eps=eps, gamma=gamma, beta=beta)
    out2 = prenorm_gelu(x)
    jax.block_until_ready(out2)
    ref2 = jax.nn.gelu(ln_ref(x))
    assert out2.shape == (batch, seq, dim)
    assert jnp.allclose(out2, ref2, atol=1e-4, rtol=1e-4)

    # 4) Fully generic fn (not fusable): LayerNorm kernel then the fn as plain JAX.
    generic_fn = lambda y: y * 2.0 + 1.0
    prenorm_gen = PreNorm(dim, generic_fn, eps=eps, gamma=gamma, beta=beta)
    out3 = prenorm_gen(x)
    jax.block_until_ready(out3)
    ref3 = generic_fn(ln_ref(x))
    assert out3.shape == (batch, seq, dim)
    assert jnp.allclose(out3, ref3, atol=1e-4, rtol=1e-4)

    print("KERNEL_OK")
</pallas_src>

<mosaic_0001>
module attributes {stable_mosaic.version = 11 : i64} {
  func.func @_prenorm_linear_resident_kernel(%arg0: i32, %arg1: memref<8x32xf32, #tpu.memory_space<vmem>>, %arg2: memref<32x32xf32, #tpu.memory_space<vmem>>, %arg3: memref<1x32xf32, #tpu.memory_space<vmem>>, %arg4: memref<8x32xf32, #tpu.memory_space<vmem>>) attributes {dimension_semantics = [#tpu.dimension_semantics<parallel>], iteration_bounds = array<i64: 2>, scalar_prefetch = 0 : i64, scratch_operands = 0 : i64, tpu.core_type = #tpu.core_type<tc>, window_params = [{transform_indices = @transform_0, window_bounds = array<i64: 8, 32>}, {pipeline_mode = #tpu.pipeline_mode<synchronous>, transform_indices = @transform_1, window_bounds = array<i64: 32, 32>}, {pipeline_mode = #tpu.pipeline_mode<synchronous>, transform_indices = @transform_2, window_bounds = array<i64: 1, 32>}, {transform_indices = @transform_3, window_bounds = array<i64: 8, 32>}]} {
    %c0 = arith.constant 0 : index
    %c0_0 = arith.constant 0 : index
    %0 = vector.load %arg1[%c0, %c0_0] : memref<8x32xf32, #tpu.memory_space<vmem>>, vector<8x32xf32>
    %cst = arith.constant dense<0.000000e+00> : vector<8xf32>
    %1 = vector.multi_reduction <add>, %0, %cst [1] : vector<8x32xf32> to vector<8xf32>
    %2 = vector.shape_cast %1 : vector<8xf32> to vector<8x1xf32>
    %cst_1 = arith.constant 3.200000e+01 : f32
    %3 = vector.broadcast %cst_1 : f32 to vector<8x1xf32>
    %4 = arith.divf %2, %3 : vector<8x1xf32>
    %5 = vector.broadcast %4 : vector<8x1xf32> to vector<8x32xf32>
    %6 = arith.subf %0, %5 : vector<8x32xf32>
    %7 = arith.mulf %6, %6 : vector<8x32xf32>
    %cst_2 = arith.constant dense<0.000000e+00> : vector<8xf32>
    %8 = vector.multi_reduction <add>, %7, %cst_2 [1] : vector<8x32xf32> to vector<8xf32>
    %9 = vector.shape_cast %8 : vector<8xf32> to vector<8x1xf32>
    %cst_3 = arith.constant 3.200000e+01 : f32
    %10 = vector.broadcast %cst_3 : f32 to vector<8x1xf32>
    %11 = arith.divf %9, %10 : vector<8x1xf32>
    %cst_4 = arith.constant 9.99999974E-6 : f32
    %12 = vector.broadcast %cst_4 : f32 to vector<8x1xf32>
    %13 = arith.addf %11, %12 : vector<8x1xf32>
    %14 = math.rsqrt %13 : vector<8x1xf32>
    %15 = vector.broadcast %14 : vector<8x1xf32> to vector<8x32xf32>
    %16 = arith.mulf %6, %15 : vector<8x32xf32>
    %c0_5 = arith.constant 0 : index
    %c0_6 = arith.constant 0 : index
    %17 = vector.load %arg2[%c0_5, %c0_6] : memref<32x32xf32, #tpu.memory_space<vmem>>, vector<32x32xf32>
    %cst_7 = arith.constant dense<0.000000e+00> : vector<8x32xf32>
    %18 = tpu.matmul %16, %17, %cst_7 {dimension_numbers = #tpu.dot_dimension_numbers<[1], [0], [0], [1], [0, 0, 1, 1], [], []>} : vector<8x32xf32>, vector<32x32xf32>, vector<8x32xf32> -> vector<8x32xf32>
    %c0_8 = arith.constant 0 : index
    %c0_9 = arith.constant 0 : index
    %19 = vector.load %arg3[%c0_8, %c0_9] : memref<1x32xf32, #tpu.memory_space<vmem>>, vector<1x32xf32>
    %20 = vector.broadcast %19 : vector<1x32xf32> to vector<8x32xf32>
    %21 = arith.addf %18, %20 : vector<8x32xf32>
    %c0_10 = arith.constant 0 : index
    %c0_11 = arith.constant 0 : index
    %22 = vector.load %arg4[%c0_10, %c0_11] : memref<8x32xf32, #tpu.memory_space<vmem>>, vector<8x32xf32>
    tpu.vector_store %arg4[%c0_10, %c0_11], %21 {strides = array<i32>} : memref<8x32xf32, #tpu.memory_space<vmem>>, vector<8x32xf32>,
    return
  }
  func.func @transform_0(%arg0: i32) -> (i32, i32) {
    %c0_i32 = arith.constant 0 : i32
    %c0_i32_0 = arith.constant 0 : i32
    return %arg0, %c0_i32 : i32, i32
  }
  func.func @transform_1(%arg0: i32) -> (i32, i32) {
    %c0_i32 = arith.constant 0 : i32
    %c0_i32_0 = arith.constant 0 : i32
    %c0_i32_1 = arith.constant 0 : i32
    return %c0_i32, %c0_i32_0 : i32, i32
  }
  func.func @transform_2(%arg0: i32) -> (i32, i32) {
    %c0_i32 = arith.constant 0 : i32
    %c0_i32_0 = arith.constant 0 : i32
    %c0_i32_1 = arith.constant 0 : i32
    return %c0_i32, %c0_i32_0 : i32, i32
  }
  func.func @transform_3(%arg0: i32) -> (i32, i32) {
    %c0_i32 = arith.constant 0 : i32
    %c0_i32_0 = arith.constant 0 : i32
    return %arg0, %c0_i32 : i32, i32
  }
}

</mosaic_0001>

<bundles_post_ra>
// kernel: tpu_custom_call.1
= control target key start
LH: loop header
LB: loop body
LE: loop exit
PB: predicated region body
PF: predicated region fallthrough
CT: control target
= control target key end

     0   :  { %8 = vsyncpa [#allocation3], 0  ;;  %s863_s0 = inlined_call_operand.hbm [shape: f32[16,32], index: 0, kind: input, shape index: {}]   ;;  %s864_s1 = inlined_call_operand.hbm [shape: f32[32,32], index: 1, kind: input, shape index: {}]   ;;  %s865_s2 = inlined_call_operand.vmem [shape: f32[1,32], index: 2, kind: input, shape index: {}]   ;;  %s866_s3 = inlined_call_operand.hbm [shape: f32[16,32], index: 3, kind: output, shape index: {}]  }
   0x1   :  { %10 = vsyncpa [#allocation3 + $0x1], 0 }
   0x2   :  { %11 = vsyncpa [#allocation6], 0 }
   0x3   :  { %12 = vsyncpa [#allocation4], 0 }
   0x4   :  { %14 = vsyncpa [#allocation4 + $0x1], 0  ;;  %s656_s12 = smov 0   ;;  %s658_s13 = smov 0  }
   0x5   :  { %s660_s14 = smov 0   ;;  %s662_s15 = smov 0  }
   0x6 LB: > { %s677_s16 = sadd.s32 4294967295, %s626_s15   ;;  %s396_s17 = sadd.s32 4294967294, %s626_s15   ;;  %s626_s15 = sphi %s662_s15, %s886_s15   ;;  %s622_s14 = sphi %s660_s14, %s885_s14   ;;  %s618_s13 = sphi %s658_s13, %s884_s13   ;;  %s614_s12 = sphi %s656_s12, %s883_s12  }
   0x7   : > { %p40_p0 = scmp.ne.s32.totalorder %s618_s13, %s614_s12  ;;  %p867_p1 = scmp.eq.s32.totalorder %s677_s16, 0 }
   0x8   : > { %p112_p3 = scmp.eq.s32.totalorder %s396_s17, 1  ;;  %p397_p5 = scmp.ge.s32.totalorder %s626_s15, 1 }
   0x9   : > { %p686_p4 = por %p867_p1, %p40_p0  ;;  %p119_p7 = scmp.lt.s32.totalorder %s626_s15, 3 }
   0xa   : > { %p691_p6 = por %p112_p3, %p40_p0  ;;  %s628_s21 = smov [#allocation5]  }
   0xb   : > { %s870_s18 = scalar_select %p686_p4, 1, 0 }
   0xc   : > { %s871_s19 = scalar_select %p691_p6, 1, 0 }
   0xd   : > { %p696_p8 = pnand %p397_p5, %p119_p7  ;;  %s131_s22 = sshll.u32 %s628_s21, 4  ;;  %s700_s22 = int_to_ptr.vmem [resolvable:$true] %s131_s22 }
   0xe   : > { %s712_s24 = sadd.s32 1, %s626_s15   ;;  %s27_s25 = sadd.s32 1, %s622_s14 }
   0xf   : > { %s872_s20 = scalar_select %p696_p8, 1, 0 }
  0x10   : > { %p442_p9 = pneg %p696_p8  ;;  %s24_s26 = ssub.s32 %s626_s15, %s712_s24 }
  0x11   : > { %s498_s29 = scalar_lea.hbm %s864_s1, 512 }
  0x12   : > { %p707_p11 = pnand %p442_p9, %p867_p1  ;;  %p499_p12 = scmp.ne.s32.totalorder %s864_s1, %s498_s29 }
  0x13   : > { %p505_p5 = scmp.lt.u32.totalorder %s498_s29, %s864_s1 }
  0x14   : > { %p500_p13 = pneg %p707_p11 }
  0x16   : > { %p501_p0 = pnand %p500_p13, %p499_p12 }
  0x18   : > { %p502_p3 = pneg %p501_p0 }
  0x1a   : > { %p507_p7 = pnand %p505_p5, %p502_p3 }
  0x1c   : > { %510 = shalt.err (!%p507_p7)
}
  0x1d   : > { %s511_s7 = scalar_lea.vmem %s700_s22, 512  ;;  %p519_p2 = scmp.lt.s32.totalorder %s700_s22, %s700_s22 }
  0x1e   : > { %p512_p9 = scmp.ne.s32.totalorder %s700_s22, %s511_s7  ;;  %p520_p6 = scmp.lt.s32.totalorder %s511_s7, %s511_s7 }
  0x20   : > { %p514_p10 = pnand %p512_p9, %p500_p13  ;;  %p521_p4 = por %p520_p6, %p519_p2 }
  0x22   : > { %p515_p1 = pneg %p514_p10 }
  0x24   : > { %p522_p8 = pnand %p521_p4, %p515_p1 }
  0x26   : > { %525 = shalt.err (!%p522_p8)
}
  0x27   : > { %s629_s8 = smov 128   ;;  %s630_s9 = smov 8  }
  0x28   : > { %445 = dma.hbm_to_vmem [thread:$0]  (!%p707_p11), %s864_s1, 512, %s700_s22, [#allocation6], %s629_s8, %s629_s8, %s630_s9  }
  0x29   : > { %p25_p2 = scmp.eq.s32.totalorder %s24_s26, 0  ;;  %p34_p1 = scmp.ne.s32.totalorder %s622_s14, %s618_s13 }
  0x2a   : > { %p35_p4 = scmp.eq.s32.totalorder %s626_s15, 0  ;;  %p455_p6 = scmp.lt.s32.totalorder %s626_s15, 2 }
  0x2b   : > { %s743_s17 = scalar_select %p25_p2, %s622_s14, %s27_s25  }
  0x2c   : > { %p36_p8 = por %p35_p4, %p34_p1  ;;  %p874_p10 = scmp.eq.s32.totalorder %s677_s16, 1 }
  0x2d   : > { %s148_s27 = sand.u32 1, %s622_s14   ;;  %s401_s28 = sshll.u32 %s626_s15, 7 }
  0x2e   : > { %p747_p12 = por %p874_p10, %p34_p1  ;;  %s400_s29 = sshll.u32 %s148_s27, 3 }
  0x2f   : > { %s756_s4 = scalar_lea.hbm %s863_s0, %s401_s28  ;;  %s152_s22 = scalar_lea.vmem [#allocation2], %s400_s29 }
  0x30   : > { %s159_s25 = sshll.u32 %s152_s22, 4  ;;  %p758_p11 = pnand %p455_p6, %p36_p8  ;;  %s762_s25 = int_to_ptr.vmem [resolvable:$true] %s159_s25 }
  0x31   : > { %s149_s5 = scalar_lea.sflag [#allocation3], %s148_s27  ;;  %s526_s6 = scalar_lea.hbm %s756_s4, 128 }
  0x32   : > { %p527_p13 = scmp.ne.s32.totalorder %s756_s4, %s526_s6  ;;  %p528_p0 = pneg %p758_p11 }
  0x33   : > { %s531_s9 = scalar_lea.hbm %s863_s0, 256  ;;  %p532_p7 = scmp.lt.u32.totalorder %s756_s4, %s863_s0 }
  0x34   : > { %p529_p3 = pnand %p528_p0, %p527_p13  ;;  %p533_p9 = scmp.lt.u32.totalorder %s531_s9, %s526_s6 }
  0x35   : > { %p535_p1 = scmp.lt.u32.totalorder %s526_s6, %s756_s4 }
  0x36   : > { %p530_p5 = pneg %p529_p3  ;;  %p534_p2 = por %p533_p9, %p532_p7 }
  0x38   : > { %p536_p4 = por %p535_p1, %p534_p2 }
  0x3a   : > { %p537_p6 = pnand %p536_p4, %p530_p5 }
  0x3c   : > { %540 = shalt.err (!%p537_p6)
}
  0x3d   : > { %s541_s27 = scalar_lea.vmem %s762_s25, 128  ;;  %s631_s28 = smov [#allocation2]  }
  0x3e   : > { %p542_p8 = scmp.ne.s32.totalorder %s762_s25, %s541_s27  ;;  %s546_s29 = sshll.u32 %s631_s28, 4  ;;  %s547_s29 = int_to_ptr.vmem [resolvable:$false] %s546_s29 }
  0x3f   : > { %s548_s23 = scalar_lea.vmem %s547_s29, 256  ;;  %p549_p3 = scmp.lt.s32.totalorder %s762_s25, %s547_s29 }
  0x40   : > { %p544_p10 = pnand %p542_p8, %p528_p0  ;;  %p550_p7 = scmp.lt.s32.totalorder %s548_s23, %s541_s27 }
  0x42   : > { %p545_p13 = pneg %p544_p10  ;;  %p551_p9 = por %p550_p7, %p549_p3 }
  0x44   : > { %p552_p2 = pnand %p551_p9, %p545_p13 }
  0x46   : > { %555 = shalt.err (!%p552_p2)
}
  0x47   : > { %449 = dma.hbm_to_vmem [thread:$0]  (!%p758_p11), %s756_s4, 128, %s762_s25, %s149_s5  }
  0x48   : > { %p877_p5 = scmp.ne.s32.totalorder %s872_s20, 0 }
  0x49   : > { %s792_s30 = sand.u32 (!%p877_p5), 1, %s618_s13   ;;  %p878_p0 = scmp.ne.s32.totalorder (!%p877_p5), %s870_s18, 0 }
  0x4a   : > { %168 = sbr.rel (%p877_p5) target bundleno = 623 (0x26f), region = 32  ;;  %s403_s22 = sshll.u32 (!%p877_p5), %s792_s30, 3 }
  0x4b   : > { %s171_s6 = scalar_lea.sflag (!%p877_p5), [#allocation3], %s792_s30  ;;  %s174_s7 = scalar_lea.vmem (!%p877_p5), [#allocation2], %s403_s22 }
  0x51   : > { %601 = dma.done.wait (%p878_p0), %s171_s6, 128  }
  0x52   : > { %603 = vsyncadd (%p878_p0), %s171_s6, 4294967168  ;;  %p879_p11 = scmp.eq.s32.totalorder %s677_s16, 0 }
  0x54   : > { %605 = dma.done.wait (%p879_p11), [#allocation6], 512   ;;  %p880_p1 = pmov %p879_p11 }
  0x55   : > { %vm202_vm0 = vcmask 261120   ;;  %v201_v0 = vld [vmem:[%s174_s7] sm:$0xff]  ;;  %v217_v7 = vld [vmem:[#allocation5] sm:$0xff]  ;;  %v218_v8 = vld [vmem:[#allocation5 + $0x8] sm:$0xff]  ;;  %v632_v10 = vmov 0.0|0.0   ;;  %vm633_vm1 = vmmov 0  }
  0x56   : > { %607 = vsyncadd (%p880_p1), [#allocation6], 4294966784  ;;  %v203_v1 = vsel %vm202_vm0, %v201_v0, 0.0  ;;  %v219_v9 = vld [vmem:[#allocation5 + $0x10] sm:$0xff]  ;;  %428 = vmatprep.subr.bf16.mxu0 %v632_v10  ;;  %v429_v11 = vpack.c.bf16 %v218_v8, %v217_v7  ;;  %v220_v12 = vld [vmem:[#allocation5 + $0x18] sm:$0xff]  ;;  %v634_v13 = vmov 0.0  }
  0x57   : > { %204 = vadd.xlane.f32.xlu0 %v203_v1  ;;  %425 = vmatprep.mubr.msk.f32.mxu0 %vm633_vm1, %v634_v13  ;;  %v432_v14 = vpack.c.bf16 %v220_v12, %v219_v9  ;;  %v406_v20 = vld [vmem:[%s865_s2] ss:$0 sm:$0xff]  ;;  %s409_s4 = sshll.u32 %s677_s16, 7  ;;  %s200_s25 = scalar_lea.vmem [#allocation7], %s403_s22 }
  0x58   : > { %430 = vmatpush3.bf16.msra.mxu0 %v429_v11  ;;  %s316_s26 = sshll.u32 %s200_s25, 4  ;;  %s818_s9 = scalar_lea.hbm %s866_s3, %s409_s4  ;;  %s820_s26 = int_to_ptr.vmem [resolvable:$true] %s316_s26 }
  0x59   : > { %431 = vmatprep.subr.bf16.mxu0 %v632_v10  ;;  %s303_s10 = scalar_lea.sflag [#allocation4], %s792_s30  ;;  %s556_s16 = scalar_lea.vmem %s820_s26, 128 }
  0x5a   : > { %p557_p4 = scmp.ne.s32.totalorder %s820_s26, %s556_s16  ;;  %s635_s11 = smov [#allocation7]  }
  0x5b   : > { %s560_s27 = sshll.u32 %s635_s11, 4  ;;  %s561_s27 = int_to_ptr.vmem [resolvable:$false] %s560_s27 }
  0x5c   : > { %433 = vmatpush3.bf16.msra.mxu0 %v432_v14  ;;  %p558_p6 = pnand %p557_p4, %p747_p12  ;;  %s562_s28 = scalar_lea.vmem %s561_s27, 256 }
  0x5d   : > { %p563_p10 = scmp.lt.s32.totalorder %s820_s26, %s561_s27  ;;  %p564_p13 = scmp.lt.s32.totalorder %s562_s28, %s556_s16 }
  0x5e   : > { %p559_p8 = pneg %p558_p6 }
  0x5f   : > { %p565_p3 = por %p564_p13, %p563_p10 }
  0x61   : > { %p566_p7 = pnand %p565_p3, %p559_p8 }
  0xe4   : > { %v205_v2 = vpop.xlane.xlu0 %204 }
  0xe5   : > { %v207_v3 = vmul.f32 0.03125, %v205_v2 }
  0xe7   : > { %v208_v4 = vsub.f32 %v201_v0, %v207_v3 }
  0xe9   : > { %v209_v5 = vmul.f32 %v208_v4, %v208_v4 }
  0xeb   : > { %v210_v6 = vsel %vm202_vm0, %v209_v5, 0.0 }
  0xec   : > { %211 = vadd.xlane.f32.xlu0 %v210_v6 }
 0x179   : > { %v212_v15 = vpop.xlane.xlu0 %211 }
 0x17a   : > { %v213_v16 = vmul.f32 0.03125, %v212_v15 }
 0x17c   : > { %v214_v17 = vadd.f32 1e-05, %v213_v16 }
 0x17e   : > { %496 = vrsqrt.f32 %v214_v17 }
 0x188   : > { %v497_v18 = vpop.eup %496 }
 0x189   : > { %v216_v19 = vmul.f32 %v497_v18, %v208_v4 }
 0x18b   : > { %426 = vmatmul.mubr.msk.f32.vlgmr.msra.gmra.mrb[0].mxu0 %vm202_vm0, %v216_v19 }
 0x25e   : > { %v297_v21 = vpop.f32.mrb[0].mxu0 }
 0x25f   : > { %v298_v22 = vadd.f32 %v406_v20, %v297_v21  ;;  %v427_v23 = vpop.f32.mrb[1].mxu0 }
 0x261   : > { %301 = vst.msk [vmem:[%s200_s25] sm:$0xff] %vm202_vm0, %v298_v22 }
 0x262   : > { %569 = shalt.err (!%p566_p7)
}
 0x263   : > { %s570_s29 = scalar_lea.hbm %s818_s9, 128  ;;  %s574_s22 = scalar_lea.hbm %s866_s3, 256 }
 0x264   : > { %p571_p9 = scmp.ne.s32.totalorder %s818_s9, %s570_s29  ;;  %p575_p0 = scmp.lt.u32.totalorder %s818_s9, %s866_s3 }
 0x265   : > { %p576_p11 = scmp.lt.u32.totalorder %s574_s22, %s570_s29  ;;  %p578_p4 = scmp.lt.u32.totalorder %s570_s29, %s818_s9 }
 0x266   : > { %p572_p2 = pnand %p571_p9, %p747_p12 }
 0x267   : > { %p577_p1 = por %p576_p11, %p575_p0 }
 0x268   : > { %p573_p5 = pneg %p572_p2 }
 0x269   : > { %p579_p6 = por %p578_p4, %p577_p1 }
 0x26b   : > { %p580_p8 = pnand %p579_p6, %p573_p5 }
 0x26d   : > { %583 = shalt.err (!%p580_p8)
}
 0x26e   : > { %440 = dma.vmem_to_hbm [thread:$0]  (%p747_p12), %s820_s26, 128, %s818_s9, %s303_s10  }
 0x26f PF: > { %s328_s18 = sand.u32 1, %s614_s12   ;;  %p881_p10 = scmp.ne.s32.totalorder %s871_s19, 0 }
 0x270   : > { %p882_p13 = scmp.ge.s32.totalorder %s626_s15, 2  ;;  %s329_s20 = scalar_lea.sflag [#allocation4], %s328_s18 }
 0x272   : > { %p451_p3 = pnand %p882_p13, %p881_p10 }
 0x274   : > { %609 = dma.done.wait (!%p451_p3), %s329_s20, 128  }
 0x275   : > { %611 = vsyncadd (!%p451_p3), %s329_s20, 4294967168  ;;  %p17_p7 = scmp.ge.s32.totalorder %s712_s24, 4   ;;  %s883_s12 = smov %s618_s13 }
 0x276   : > { %s884_s13 = smov %s622_s14  ;;  %s885_s14 = smov %s743_s17 }
 0x277   : > { %s886_s15 = smov %s712_s24  ;;  %19 = sbr.rel (!%p17_p7) target bundleno = 6 (0x6), region = 81 }
 0x27e   :  { %334 = vsyncpa [#allocation3], 1 }
 0x27f   :  { %336 = vsyncpa [#allocation3 + $0x1], 1 }
 0x280   :  { %337 = vsyncpa [#allocation6], 1 }
 0x281   :  { %338 = vsyncpa [#allocation4], 1 }
 0x282   :  { %340 = vsyncpa [#allocation4 + $0x1], 1 }

</bundles_post_ra>
